<compile_context>
chip_gen: v7x
topology: tpu7x:2x2x1
jax: 0.10.0
libtpu: 0.0.40
codegen_flags: <defaults>
</compile_context>

<pallas_src>
import jax
import jax.numpy as jnp
from jax.experimental import pallas as pl
from jax.experimental.pallas import tpu as pltpu


def _round_up(x, m):
    return ((x + m - 1) // m) * m


def _patch_embed_kernel(x_ref, w_ref, b_ref, o_ref):
    # x_ref: (TM, F) bf16 activation tile, w_ref: (F, Dp) bf16 resident weight,
    # b_ref: (1, Dp) f32 resident bias, o_ref: (TM, Dp) f32 output tile.
    acc = jnp.dot(x_ref[...], w_ref[...], preferred_element_type=jnp.float32)
    o_ref[...] = (acc + b_ref[...]).astype(o_ref.dtype)


def patch_embed_pallas(x_flat, weight_t, bias, *, max_tile_m=1024):
    """x_flat: (M, F), weight_t: (F, D), bias: (D,) -> (M, D) float32."""
    M, F = x_flat.shape
    D = weight_t.shape[1]

    # Lane-dense output: pad D up to a multiple of 128 (no-op when aligned).
    D_pad = _round_up(D, 128)
    if D_pad != D:
        weight_t = jnp.pad(weight_t, ((0, 0), (0, D_pad - D)))
        bias = jnp.pad(bias, (0, D_pad - D))

    # Tile over M. Large M -> TM=1024 (multiple of 256); small M -> one tile
    # rounded to the 8-sublane granule. Partial last tiles rely on Pallas
    # block padding + masked writeback (matmul is row-independent in M, so
    # padded rows never reach visible output).
    tm = min(max_tile_m, _round_up(M, 8))
    grid_m = pl.cdiv(M, tm)

    x_bf16 = x_flat.astype(jnp.bfloat16)
    w_bf16 = weight_t.astype(jnp.bfloat16)
    bias2d = bias.reshape(1, D_pad).astype(jnp.float32)

    cost = pl.CostEstimate(
        flops=2 * M * F * D_pad,
        transcendentals=0,
        bytes_accessed=(M * F * 2 + F * D_pad * 2 + D_pad * 4 + M * D_pad * 4),
    )

    out = pl.pallas_call(
        _patch_embed_kernel,
        out_shape=jax.ShapeDtypeStruct((M, D_pad), jnp.float32),
        grid_spec=pltpu.PrefetchScalarGridSpec(
            num_scalar_prefetch=0,
            grid=(grid_m,),
            in_specs=[
                pl.BlockSpec((tm, F), lambda i: (i, 0)),      # activation tile
                pl.BlockSpec((F, D_pad), lambda i: (0, 0)),   # resident weight
                pl.BlockSpec((1, D_pad), lambda i: (0, 0)),   # resident bias
            ],
            out_specs=pl.BlockSpec((tm, D_pad), lambda i: (i, 0)),
        ),
        compiler_params=pltpu.CompilerParams(
            dimension_semantics=("parallel",),   # shard M across v7x's 2 TCs
        ),
        cost_estimate=cost,
    )(x_bf16, w_bf16, bias2d)

    # NOTE: F is kept as a single K block; only introduce a K grid axis with an
    # f32 accumulator if F grows beyond ~2048 (patchify F = p^2*C is small).
    return out[:, :D] if D_pad != D else out


def rearrange_patches(x, patch_size):
    """einops: 'b c (h s1) (w s2) -> b (h w) (s1 s2 c)'  (pure layout glue)."""
    B, C, H, W = x.shape
    s = patch_size
    h, w = H // s, W // s
    x = x.reshape(B, C, h, s, w, s)              # b c h s1 w s2
    x = jnp.transpose(x, (0, 2, 4, 3, 5, 1))      # b h w s1 s2 c
    return x.reshape(B, h * w, s * s * C)         # b (h w) (s1 s2 c)


class PatchifyPallas:
    def __init__(self, img_size, patch_size, chan_num, patch_dim, key):
        self.img_size = img_size
        self.patch_size = patch_size
        self.chan_num = chan_num
        self.patch_dim = patch_dim
        self.flattened_size = patch_size ** 2 * chan_num

        # Deterministic init mimicking nn.Linear: U(-1/sqrt(fan_in), 1/sqrt(fan_in)).
        # PyTorch weight is (patch_dim, flattened_size); we keep the transposed
        # (flattened_size, patch_dim) form so the kernel does x @ W_t directly.
        k1, k2 = jax.random.split(key)
        bound = 1.0 / (self.flattened_size ** 0.5)
        self.weight_t = jax.random.uniform(
            k1, (self.flattened_size, self.patch_dim),
            minval=-bound, maxval=bound, dtype=jnp.float32)
        self.bias = jax.random.uniform(
            k2, (self.patch_dim,), minval=-bound, maxval=bound,
            dtype=jnp.float32)

        self._forward = jax.jit(self._forward_impl)

    def _forward_impl(self, x, weight_t, bias):
        B = x.shape[0]
        # Cast to bf16 before the layout transpose: the extra HBM pass the
        # rearrange costs moves half the bytes, and the MXU wants bf16 anyway.
        x = x.astype(jnp.bfloat16)
        x_flat = rearrange_patches(x, self.patch_size)        # (B, P, F)
        P, F = x_flat.shape[1], x_flat.shape[2]
        y = patch_embed_pallas(x_flat.reshape(B * P, F),
                               weight_t, bias)                # (B*P, D)
        return y.reshape(B, P, self.patch_dim)

    def __call__(self, x):
        return self._forward(x, self.weight_t, self.bias)


if __name__ == "__main__":
    # Small shapes: batch=2, channels=4, spatial=16x16, patch=4, patch_dim=32
    B, C, IMG, PATCH, PDIM = 2, 4, 16, 4, 32
    key = jax.random.PRNGKey(0)
    k_x, k_params = jax.random.split(key)

    x = jax.random.normal(k_x, (B, C, IMG, IMG), dtype=jnp.float32)

    model = PatchifyPallas(IMG, PATCH, C, PDIM, k_params)
    out = jax.block_until_ready(model(x))

    # Reference with the same bf16 operand rounding and f32 accumulation.
    x_flat_ref = rearrange_patches(
        x.astype(jnp.bfloat16), PATCH).astype(jnp.float32)
    w_ref = model.weight_t.astype(jnp.bfloat16).astype(jnp.float32)
    ref = x_flat_ref @ w_ref + model.bias

    assert out.shape == (B, (IMG // PATCH) ** 2, PDIM), out.shape
    max_err = float(jnp.max(jnp.abs(out - ref)))
    assert jnp.allclose(out, ref, atol=1e-3, rtol=1e-3), max_err

    print("KERNEL_OK")
</pallas_src>

<mosaic_0001>
module attributes {stable_mosaic.version = 11 : i64} {
  func.func @_patch_embed_kernel(%arg0: i32, %arg1: memref<32x64xbf16, #tpu.memory_space<vmem>>, %arg2: memref<64x128xbf16, #tpu.memory_space<vmem>>, %arg3: memref<1x128xf32, #tpu.memory_space<vmem>>, %arg4: memref<32x128xf32, #tpu.memory_space<vmem>>) attributes {dimension_semantics = [#tpu.dimension_semantics<parallel>], iteration_bounds = array<i64: 1>, scalar_prefetch = 0 : i64, scratch_operands = 0 : i64, tpu.core_type = #tpu.core_type<tc>, window_params = [{transform_indices = @transform_0, window_bounds = array<i64: 32, 64>}, {pipeline_mode = #tpu.pipeline_mode<synchronous>, transform_indices = @transform_1, window_bounds = array<i64: 64, 128>}, {pipeline_mode = #tpu.pipeline_mode<synchronous>, transform_indices = @transform_2, window_bounds = array<i64: 1, 128>}, {transform_indices = @transform_3, window_bounds = array<i64: 32, 128>}]} {
    %c0 = arith.constant 0 : index
    %c0_0 = arith.constant 0 : index
    %0 = vector.load %arg1[%c0, %c0_0] : memref<32x64xbf16, #tpu.memory_space<vmem>>, vector<32x64xbf16>
    %c0_1 = arith.constant 0 : index
    %c0_2 = arith.constant 0 : index
    %1 = vector.load %arg2[%c0_1, %c0_2] : memref<64x128xbf16, #tpu.memory_space<vmem>>, vector<64x128xbf16>
    %cst = arith.constant dense<0.000000e+00> : vector<32x128xf32>
    %2 = tpu.matmul %0, %1, %cst {dimension_numbers = #tpu.dot_dimension_numbers<[1], [0], [0], [1], [0, 0, 1, 1], [], []>} : vector<32x64xbf16>, vector<64x128xbf16>, vector<32x128xf32> -> vector<32x128xf32>
    %c0_3 = arith.constant 0 : index
    %c0_4 = arith.constant 0 : index
    %3 = vector.load %arg3[%c0_3, %c0_4] : memref<1x128xf32, #tpu.memory_space<vmem>>, vector<1x128xf32>
    %4 = vector.broadcast %3 : vector<1x128xf32> to vector<32x128xf32>
    %5 = arith.addf %2, %4 : vector<32x128xf32>
    %c0_5 = arith.constant 0 : index
    %c0_6 = arith.constant 0 : index
    %6 = vector.load %arg4[%c0_5, %c0_6] : memref<32x128xf32, #tpu.memory_space<vmem>>, vector<32x128xf32>
    tpu.vector_store %arg4[%c0_5, %c0_6], %5 {strides = array<i32>} : memref<32x128xf32, #tpu.memory_space<vmem>>, vector<32x128xf32>,
    return
  }
  func.func @transform_0(%arg0: i32) -> (i32, i32) {
    %c0_i32 = arith.constant 0 : i32
    %c0_i32_0 = arith.constant 0 : i32
    return %arg0, %c0_i32 : i32, i32
  }
  func.func @transform_1(%arg0: i32) -> (i32, i32) {
    %c0_i32 = arith.constant 0 : i32
    %c0_i32_0 = arith.constant 0 : i32
    %c0_i32_1 = arith.constant 0 : i32
    return %c0_i32, %c0_i32_0 : i32, i32
  }
  func.func @transform_2(%arg0: i32) -> (i32, i32) {
    %c0_i32 = arith.constant 0 : i32
    %c0_i32_0 = arith.constant 0 : i32
    %c0_i32_1 = arith.constant 0 : i32
    return %c0_i32, %c0_i32_0 : i32, i32
  }
  func.func @transform_3(%arg0: i32) -> (i32, i32) {
    %c0_i32 = arith.constant 0 : i32
    %c0_i32_0 = arith.constant 0 : i32
    return %arg0, %c0_i32 : i32, i32
  }
}

</mosaic_0001>

<bundles_post_ra>
// kernel: _forward_impl.1
= control target key start
LH: loop header
LB: loop body
LE: loop exit
PB: predicated region body
PF: predicated region fallthrough
CT: control target
= control target key end

     0   :  { %vm69_vm0 = vcmask 523264   ;;  %s261_s0 = inlined_call_operand.vmem [shape: bf16[32,64], index: 0, kind: input, shape index: {}]   ;;  %s262_s1 = inlined_call_operand.vmem [shape: bf16[64,128], index: 1, kind: input, shape index: {}]   ;;  %s263_s2 = inlined_call_operand.vmem [shape: f32[1,128], index: 2, kind: input, shape index: {}]   ;;  %s264_s3 = inlined_call_operand.hbm [shape: f32[32,128], index: 3, kind: output, shape index: {}]  }
   0x1   :  { %v175_v0 = vld [vmem:[%s262_s1] sm:$0xff]   ;;  %v176_v1 = vld [vmem:[%s262_s1 + $0x8] sm:$0xff]   ;;  %v177_v2 = vld [vmem:[%s262_s1 + $0x10] sm:$0xff]  }
   0x2   :  { %160 = vmatprep.subr.bf16.mxu0 %v175_v0  ;;  %v179_v3 = vld [vmem:[%s261_s0] sm:$0xff]  }
   0x3   :  { %161 = vmatpush3.bf16.msra.mxu0 %v175_v0  ;;  %168 = vmatprep.mubr.msk.bf16.mxu0 %vm69_vm0, %v179_v3 }
   0x4   :  { %162 = vmatprep.subr.bf16.mxu0 %v176_v1 }
   0x5   :  { %8 = vsyncpa [#allocation3], 0  ;;  %v178_v4 = vld [vmem:[%s262_s1 + $0x18] sm:$0xff]   ;;  %v180_v5 = vld [vmem:[%s261_s0 + $0x8] sm:$0xff]   ;;  %s205_s26 = smov [#allocation2]  }
   0x6   :  { %v145_v6 = vld [vmem:[%s263_s2] ss:$0 sm:$0xff]  ;;  %s134_s27 = sshll.u32 %s205_s26, 4  ;;  %s135_s27 = int_to_ptr.vmem [resolvable:$true] %s134_s27 }
   0x7   :  { %163 = vmatpush3.bf16.msra.mxu0 %v176_v1  ;;  %s181_s0 = scalar_lea.vmem %s135_s27, 512  ;;  %p186_p1 = scmp.lt.s32.totalorder %s135_s27, %s135_s27 }
   0x8   :  { %164 = vmatprep.subr.bf16.mxu0 %v177_v2  ;;  %p182_p0 = scmp.ne.s32.totalorder %s135_s27, %s181_s0  ;;  %p187_p2 = scmp.lt.s32.totalorder %s181_s0, %s181_s0 }
   0xa   :  { %p188_p3 = por %p187_p2, %p186_p1 }
   0xb   :  { %165 = vmatpush3.bf16.msra.mxu0 %v177_v2 }
   0xc   :  { %166 = vmatprep.subr.bf16.mxu0 %v178_v4  ;;  %p189_p4 = pnand %p188_p3, %p182_p0 }
   0xf   :  { %167 = vmatpush3.bf16.msra.mxu0 %v178_v4 }
  0x12   :  { %169 = vmatmul.mubr.msk.bf16.vlgmr.msra.gmra.mrb[0].mxu0 %vm69_vm0, %v180_v5 }
  0xe5   :  { %v170_v7 = vpop.f32.mrb[0].mxu0 }
  0xe6   :  { %v119_v8 = vadd.f32 %v170_v7, %v145_v6  ;;  %v110_v9 = vpop.f32.mrb[1].mxu0 }
  0xe7   :  { %v111_v10 = vadd.f32 %v145_v6, %v110_v9  ;;  %v171_v11 = vpop.f32.mrb[2].mxu0 }
  0xe8   :  { %127 = vst [vmem:[#allocation2 + $0x10] sm:$0xff] %v119_v8  ;;  %v122_v12 = vadd.f32 %v171_v11, %v145_v6  ;;  %v113_v13 = vpop.f32.mrb[3].mxu0 }
  0xe9   :  { %125 = vst [vmem:[#allocation2] sm:$0xff] %v111_v10  ;;  %v114_v14 = vadd.f32 %v145_v6, %v113_v13 }
  0xea   :  { %128 = vst [vmem:[#allocation2 + $0x18] sm:$0xff] %v122_v12 }
  0xeb   :  { %126 = vst [vmem:[#allocation2 + $0x8] sm:$0xff] %v114_v14 }
  0xec   :  { %192 = shalt.err (!%p189_p4)
}
  0xed   :  { %s193_s28 = scalar_lea.hbm %s264_s3, 512 }
  0xee   :  { %p194_p5 = scmp.ne.s32.totalorder %s264_s3, %s193_s28  ;;  %p197_p6 = scmp.lt.u32.totalorder %s193_s28, %s264_s3 }
  0xf0   :  { %p199_p7 = pnand %p197_p6, %p194_p5 }
  0xf2   :  { %202 = shalt.err (!%p199_p7)
}
  0xf3   :  { %s206_s6 = smov 128   ;;  %s207_s7 = smov 8  }
  0xf4   :  { %140 = dma.vmem_to_hbm [thread:$0]  %s135_s27, 512, %s264_s3, [#allocation3], %s206_s6, %s206_s6, %s207_s7  }
  0xf5   :  { %203 = dma.done.wait [#allocation3], 512  }
  0xf6   :  { %204 = vsyncadd [#allocation3], 4294966784 }
  0xf7   :  { %144 = vsyncpa [#allocation3], 1 }

</bundles_post_ra>
